<compile_context>
chip_gen: v7x
topology: tpu7x:2x2x1
jax: 0.10.0
libtpu: 0.0.40
codegen_flags: <defaults>
</compile_context>

<pallas_src>
import functools

import jax
import jax.numpy as jnp
from jax.experimental import pallas as pl
from jax.experimental.pallas import tpu as pltpu

# Small shapes consistent with the module: batch=2, seq=8, dmodel=32, inner_dim=64.
B, T, D, FF = 2, 8, 32, 64


def _ff_kernel(x_ref, w1p_ref, w2p_ref, o_ref, *, d, ff):
    """x_ref: (M, d); w1p_ref: (d+1, ff) = [W1.T ; b1]; w2p_ref: (ff+1, d) = [W2.T ; b2]."""
    x = x_ref[...]
    # inner Linear + relu:  h = relu(x @ W1.T + b1)
    h = jnp.dot(x, w1p_ref[:d, :], preferred_element_type=jnp.float32) + w1p_ref[d:d + 1, :]
    h = jnp.maximum(h, 0.0)
    # out Linear:           y = h @ W2.T + b2
    y = jnp.dot(h, w2p_ref[:ff, :], preferred_element_type=jnp.float32) + w2p_ref[ff:ff + 1, :]
    o_ref[...] = y.astype(o_ref.dtype)


def pack_ff_params(w1, b1, w2, b2):
    """One-time (init-time) packing of torch-layout Linear params.

    w1: (inner_dim, dmodel), b1: (inner_dim,), w2: (dmodel, inner_dim), b2: (dmodel,).
    Returns w1p: (dmodel+1, inner_dim), w2p: (inner_dim+1, dmodel) with the bias
    appended as the last row of the pre-transposed weight.
    """
    w1p = jnp.concatenate([w1.T, b1[None, :]], axis=0)
    w2p = jnp.concatenate([w2.T, b2[None, :]], axis=0)
    return w1p, w2p


def feedforward(x, w1p, w2p):
    """Forward pass.  x: (B, T, dmodel); w1p/w2p: packed params from pack_ff_params."""
    b_, t_, d_ = x.shape
    ff = w1p.shape[1]
    m = b_ * t_
    x2 = x.reshape(m, d_)  # flatten batch into the row (sublane) dimension

    vmem = pl.BlockSpec(memory_space=pltpu.MemorySpace.VMEM)
    # Single grid step: 3 input DMAs + 1 output DMA, whole problem VMEM-resident.
    # If M (=B*T) grows to hundreds/thousands of rows, switch to a grid over M
    # tiles (weights resident, dimension_semantics=("parallel",)) so v7x's two
    # TensorCores both participate, and set vmem_limit_bytes against 64 MiB.
    out = pl.pallas_call(
        functools.partial(_ff_kernel, d=d_, ff=ff),
        out_shape=jax.ShapeDtypeStruct((m, d_), x.dtype),
        in_specs=[vmem, vmem, vmem],
        out_specs=vmem,
    )(x2, w1p, w2p)
    return out.reshape(b_, t_, d_)


def feedforward_ref(x, w1, b1, w2, b2):
    """Pure-JAX reference reproducing the PyTorch forward exactly (torch layout)."""
    h = jnp.maximum(x @ w1.T + b1, 0.0)
    return h @ w2.T + b2


if __name__ == "__main__":
    key = jax.random.PRNGKey(0)
    ks = jax.random.split(key, 5)
    x = jax.random.normal(ks[0], (B, T, D), jnp.float32)
    # torch Linear parameter shapes: inner.weight (FF, D), inner.bias (FF,),
    #                                out.weight   (D, FF), out.bias   (D,)
    w1 = jax.random.normal(ks[1], (FF, D), jnp.float32) / jnp.sqrt(jnp.float32(D))
    b1 = jax.random.normal(ks[2], (FF,), jnp.float32) * 0.1
    w2 = jax.random.normal(ks[3], (D, FF), jnp.float32) / jnp.sqrt(jnp.float32(FF))
    b2 = jax.random.normal(ks[4], (D,), jnp.float32) * 0.1

    # Init-time packing (outside the per-call forward path).
    w1p, w2p = pack_ff_params(w1, b1, w2, b2)
    w1p, w2p = jax.block_until_ready((w1p, w2p))

    out = jax.block_until_ready(feedforward(x, w1p, w2p))
    ref = feedforward_ref(x, w1, b1, w2, b2)
    assert out.shape == (B, T, D), out.shape
    assert jnp.allclose(out, ref, atol=1e-4, rtol=1e-4), float(jnp.max(jnp.abs(out - ref)))
    print("KERNEL_OK")
</pallas_src>

<mosaic_0001>
module attributes {stable_mosaic.version = 11 : i64} {
  func.func @_ff_kernel(%arg0: memref<16x32xf32, #tpu.memory_space<vmem>>, %arg1: memref<33x64xf32, #tpu.memory_space<vmem>>, %arg2: memref<65x32xf32, #tpu.memory_space<vmem>>, %arg3: memref<16x32xf32, #tpu.memory_space<vmem>>) attributes {dimension_semantics = [], scalar_prefetch = 0 : i64, scratch_operands = 0 : i64, tpu.core_type = #tpu.core_type<tc>} {
    %c0 = arith.constant 0 : index
    %c0_0 = arith.constant 0 : index
    %0 = vector.load %arg0[%c0, %c0_0] : memref<16x32xf32, #tpu.memory_space<vmem>>, vector<16x32xf32>
    %c0_1 = arith.constant 0 : index
    %c0_2 = arith.constant 0 : index
    %1 = vector.load %arg1[%c0_1, %c0_2] : memref<33x64xf32, #tpu.memory_space<vmem>>, vector<32x64xf32>
    %cst = arith.constant dense<0.000000e+00> : vector<16x64xf32>
    %2 = tpu.matmul %0, %1, %cst {dimension_numbers = #tpu.dot_dimension_numbers<[1], [0], [0], [1], [0, 0, 1, 1], [], []>} : vector<16x32xf32>, vector<32x64xf32>, vector<16x64xf32> -> vector<16x64xf32>
    %c32 = arith.constant 32 : index
    %c0_3 = arith.constant 0 : index
    %3 = vector.load %arg1[%c32, %c0_3] : memref<33x64xf32, #tpu.memory_space<vmem>>, vector<1x64xf32>
    %4 = vector.broadcast %3 : vector<1x64xf32> to vector<16x64xf32>
    %5 = arith.addf %2, %4 : vector<16x64xf32>
    %cst_4 = arith.constant 0.000000e+00 : f32
    %6 = vector.broadcast %cst_4 : f32 to vector<16x64xf32>
    %7 = arith.maximumf %5, %6 : vector<16x64xf32>
    %c0_5 = arith.constant 0 : index
    %c0_6 = arith.constant 0 : index
    %8 = vector.load %arg2[%c0_5, %c0_6] : memref<65x32xf32, #tpu.memory_space<vmem>>, vector<64x32xf32>
    %cst_7 = arith.constant dense<0.000000e+00> : vector<16x32xf32>
    %9 = tpu.matmul %7, %8, %cst_7 {dimension_numbers = #tpu.dot_dimension_numbers<[1], [0], [0], [1], [0, 0, 1, 1], [], []>} : vector<16x64xf32>, vector<64x32xf32>, vector<16x32xf32> -> vector<16x32xf32>
    %c64 = arith.constant 64 : index
    %c0_8 = arith.constant 0 : index
    %10 = vector.load %arg2[%c64, %c0_8] : memref<65x32xf32, #tpu.memory_space<vmem>>, vector<1x32xf32>
    %11 = vector.broadcast %10 : vector<1x32xf32> to vector<16x32xf32>
    %12 = arith.addf %9, %11 : vector<16x32xf32>
    %c0_9 = arith.constant 0 : index
    %c0_10 = arith.constant 0 : index
    %13 = vector.load %arg3[%c0_9, %c0_10] : memref<16x32xf32, #tpu.memory_space<vmem>>, vector<16x32xf32>
    tpu.vector_store %arg3[%c0_9, %c0_10], %12 {strides = array<i32>} : memref<16x32xf32, #tpu.memory_space<vmem>>, vector<16x32xf32>,
    return
  }
}

</mosaic_0001>

<bundles_post_ra>
// kernel: tpu_custom_call.1
= control target key start
LH: loop header
LB: loop body
LE: loop exit
PB: predicated region body
PF: predicated region fallthrough
CT: control target
= control target key end

     0   :  { %vm26_vm0 = vcmask 261120   ;;  %s413_s0 = inlined_call_operand.vmem [shape: f32[16,32], index: 0, kind: input, shape index: {}]   ;;  %s414_s1 = inlined_call_operand.vmem [shape: f32[33,64], index: 1, kind: input, shape index: {}]   ;;  %s415_s2 = inlined_call_operand.vmem [shape: f32[65,32], index: 2, kind: input, shape index: {}]   ;;  %s416_s3 = inlined_call_operand.hbm [shape: f32[16,32], index: 3, kind: output, shape index: {}]  }
   0x1   :  { %v17_v0 = vld [vmem:[%s414_s1] sm:$0xff]  ;;  %v18_v1 = vld [vmem:[%s414_s1 + $0x8] sm:$0xff]  ;;  %v19_v2 = vld [vmem:[%s414_s1 + $0x10] sm:$0xff] }
   0x2   :  { %v275_v3 = vpack.c.bf16 %v18_v1, %v17_v0  ;;  %v20_v4 = vld [vmem:[%s414_s1 + $0x18] sm:$0xff]  ;;  %v15_v5 = vld [vmem:[%s413_s0] sm:$0xff]  ;;  %v111_v8 = vld [vmem:[%s415_s2 + $0x8] sm:$0xff] }
   0x3   :  { %v279_v6 = vpack.c.bf16 %v20_v4, %v19_v2  ;;  %253 = vmatprep.mubr.msk.f32.mxu0 %vm26_vm0, %v15_v5  ;;  %v110_v7 = vld [vmem:[%s415_s2] sm:$0xff]  ;;  %v112_v9 = vld [vmem:[%s415_s2 + $0x10] sm:$0xff]  ;;  %v113_v11 = vld [vmem:[%s415_s2 + $0x18] sm:$0xff] }
   0x4   :  { %276 = vmatprep.subr.bf16.mxu0 %v275_v3  ;;  %v283_v10 = vpack.c.bf16 %v111_v8, %v110_v7  ;;  %v287_v12 = vpack.c.bf16 %v113_v11, %v112_v9  ;;  %v114_v13 = vld [vmem:[%s415_s2 + $0x20] sm:$0xff]  ;;  %v115_v14 = vld [vmem:[%s415_s2 + $0x28] sm:$0xff] }
   0x5   :  { %278 = vmatpush3.bf16.msra.mxu0 %v275_v3 }
   0x6   :  { %8 = vsyncpa [#allocation3], 0  ;;  %280 = vmatprep.subr.bf16.mxu0 %v279_v6  ;;  %284 = vmatprep.subr.bf16.mxu1 %v283_v10  ;;  %v291_v15 = vpack.c.bf16 %v115_v14, %v114_v13  ;;  %v16_v16 = vld [vmem:[%s413_s0 + $0x8] sm:$0xff]  ;;  %v116_v17 = vld [vmem:[%s415_s2 + $0x30] sm:$0xff]  ;;  %vm123_vm1 = vcmask 523264   ;;  %s326_s16 = smov [#allocation2]  }
   0x7   :  { %286 = vmatpush3.bf16.msra.mxu1 %v283_v10  ;;  %v117_v18 = vld [vmem:[%s415_s2 + $0x38] sm:$0xff]  ;;  %v223_v20 = vld [vmem:[%s414_s1 + $0x20] ss:$0 sm:$0xff]  ;;  %s212_s17 = sshll.u32 %s326_s16, 4  ;;  %s213_s17 = int_to_ptr.vmem [resolvable:$true] %s212_s17 }
   0x8   :  { %288 = vmatprep.subr.bf16.mxu1 %v287_v12  ;;  %v295_v19 = vpack.c.bf16 %v117_v18, %v116_v17  ;;  %v226_v27 = vld [vmem:[%s415_s2 + $0x40] ss:$0 sm:$0xff]  ;;  %s302_s1 = scalar_lea.vmem %s213_s17, 256  ;;  %p307_p1 = scmp.lt.s32.totalorder %s213_s17, %s213_s17 }
   0x9   :  { %282 = vmatpush3.bf16.msra.mxu0 %v279_v6  ;;  %p303_p0 = scmp.ne.s32.totalorder %s213_s17, %s302_s1  ;;  %p308_p2 = scmp.lt.s32.totalorder %s302_s1, %s302_s1 }
   0xb   :  { %290 = vmatpush3.bf16.msra.mxu1 %v287_v12  ;;  %p309_p3 = por %p308_p2, %p307_p1 }
   0xc   :  { %254 = vmatmul.mubr.msk.f32.vlgmr.msra.gmra.mrb[0].mxu0 %vm26_vm0, %v16_v16  ;;  %292 = vmatprep.subr.bf16.mxu1 %v291_v15 }
   0xd   :  { %p310_p4 = pnand %p309_p3, %p303_p0 }
   0xf   :  { %294 = vmatpush3.bf16.msra.mxu1 %v291_v15 }
  0x10   :  { %296 = vmatprep.subr.bf16.mxu1 %v295_v19 }
  0x13   :  { %298 = vmatpush3.bf16.msra.mxu1 %v295_v19 }
  0xdf   :  { %v255_v21 = vpop.f32.mrb[0].mxu0 }
  0xe0   :  { %v105_v22 = vadd.f32 %v255_v21, %v223_v20  ;;  %v99_v23 = vpop.f32.mrb[1].mxu0 }
  0xe1   :  { %v100_v24 = vadd.f32 %v223_v20, %v99_v23 }
  0xe2   :  { %v109_v26 = vmax.f32 %v105_v22, 0.0 }
  0xe3   :  { %v108_v25 = vmax.f32 %v100_v24, 0.0 }
  0xe5   :  { %272 = vmatprep.mubr.msk.f32.mxu1 %vm123_vm1, %v108_v25 }
  0xe6   :  { %273 = vmatmul.mubr.msk.f32.vlgmr.msra.gmra.mrb[0].mxu1 %vm123_vm1, %v109_v26 }
 0x1b9   :  { %v274_v28 = vpop.f32.mrb[0].mxu1 }
 0x1ba   :  { %v202_v29 = vadd.f32 %v274_v28, %v226_v27  ;;  %v196_v30 = vpop.f32.mrb[1].mxu1 }
 0x1bb   :  { %v197_v31 = vadd.f32 %v226_v27, %v196_v30 }
 0x1bc   :  { %206 = vst.msk [vmem:[#allocation2 + $0x8] sm:$0xff] %vm26_vm0, %v202_v29 }
 0x1bd   :  { %205 = vst.msk [vmem:[#allocation2] sm:$0xff] %vm26_vm0, %v197_v31 }
 0x1be   :  { %313 = shalt.err (!%p310_p4)
}
 0x1bf   :  { %s314_s19 = scalar_lea.hbm %s416_s3, 256 }
 0x1c0   :  { %p315_p5 = scmp.ne.s32.totalorder %s416_s3, %s314_s19  ;;  %p318_p6 = scmp.lt.u32.totalorder %s314_s19, %s416_s3 }
 0x1c2   :  { %p320_p7 = pnand %p318_p6, %p315_p5 }
 0x1c4   :  { %323 = shalt.err (!%p320_p7)
}
 0x1c5   :  { %s327_s24 = smov 128   ;;  %s328_s25 = smov 8  }
 0x1c6   :  { %218 = dma.vmem_to_hbm [thread:$0]  %s213_s17, 256, %s416_s3, [#allocation3], %s327_s24, %s327_s24, %s328_s25  }
 0x1c7   :  { %324 = dma.done.wait [#allocation3], 256  }
 0x1c8   :  { %325 = vsyncadd [#allocation3], 4294967040 }
 0x1c9   :  { %222 = vsyncpa [#allocation3], 1 }

</bundles_post_ra>
